<compile_context>
chip_gen: v7x
topology: tpu7x:2x2x1
jax: 0.10.0
libtpu: 0.0.40
codegen_flags: <defaults>
</compile_context>

<pallas_src>
import jax
import jax.numpy as jnp
from jax.experimental import pallas as pl
from jax.experimental.pallas import tpu as pltpu


def _round_up(x, m):
    return ((x + m - 1) // m) * m


def _largest_divisor_le(n, m):
    for d in range(min(n, m), 0, -1):
        if n % d == 0:
            return d
    return 1


# ---------------------------------------------------------------------------
# Kernel bodies
# ---------------------------------------------------------------------------

def _small_c_kernel(x_ref, w_ref, b_ref, o_ref):
    """Tiny-channel path: unrolled VPU multiply-adds over a lane-dense tile.

    x_ref : (NB, C_in, TILE_P)   VMEM activation tile (spatial on lanes)
    w_ref : (C_in, C_out)        SMEM fused weights (W_main + W_search)
    b_ref : (1, C_out)           SMEM fused bias    (b_main + b_search)
    o_ref : (NB, C_out, TILE_P)  VMEM output tile
    """
    nb, c_in, _ = x_ref.shape
    c_out = o_ref.shape[1]
    outs = []
    for b in range(nb):                              # static unroll (small NB)
        x = x_ref[b].astype(jnp.float32)             # explicit f32 accumulate
        rows = []
        for co in range(c_out):                      # static unroll (small C)
            acc = x[0:1, :] * w_ref[0, co]
            for ci in range(1, c_in):
                acc = acc + x[ci:ci + 1, :] * w_ref[ci, co]
            rows.append(acc + b_ref[0, co])
        outs.append(jnp.concatenate(rows, axis=0))   # (C_out, TILE_P)
    # One full-block store instead of C_out sublane-masked row stores.
    o_ref[...] = jnp.stack(outs, axis=0).astype(o_ref.dtype)


def _mxu_kernel(x_ref, wt_ref, b_ref, o_ref):
    """Large-channel path: one fused MXU matmul per image per spatial tile.

    x_ref : (NB, C_in, TILE_P)   VMEM activation tile (bf16 for f32 inputs)
    wt_ref: (C_out, C_in)        VMEM fused weight (transposed), grid-resident
    b_ref : (C_out, 1)           VMEM fused bias (f32), grid-resident
    o_ref : (NB, C_out, TILE_P)  VMEM output tile
    """
    nb = x_ref.shape[0]
    w = wt_ref[...]
    bias = b_ref[...].astype(jnp.float32)
    for b in range(nb):                              # static unroll (small NB)
        acc = jnp.dot(w, x_ref[b], preferred_element_type=jnp.float32)
        o_ref[b] = (acc + bias).astype(o_ref.dtype)


# ---------------------------------------------------------------------------
# Wrapper
# ---------------------------------------------------------------------------

def double_branch(x_nchw, w_main, b_main, w_search, b_search,
                  *, tile_p=2048, small_c_threshold=32):
    """DoubleBranch forward: main(x) + search(x) for two 1x1 convs with bias.

    x_nchw : (N, C_in, H, W);  weights: (C_in, C_out);  biases: (C_out,)
    """
    n, c_in, h, w = x_nchw.shape
    c_out = w_main.shape[1]
    dtype = x_nchw.dtype
    out_bytes = jnp.dtype(dtype).itemsize
    tile_p = _round_up(max(tile_p, 128), 128)

    # Algebraic branch fusion: one conv instead of two (identical math up to
    # f32 rounding).
    w_sum = w_main + w_search
    b_sum = b_main + b_search

    # NCHW end-to-end; spatial (H*W) on the lane axis.  No pad / slice in the
    # wrapper: the grid uses cdiv and Pallas masks the ragged last block.
    p = h * w
    x_flat = x_nchw.reshape(n, c_in, p)

    small = max(c_in, c_out) <= small_c_threshold
    act_bytes = out_bytes if small else (2 if dtype == jnp.float32
                                         else out_bytes)

    # Generation-aware VMEM budget (v7x: 64 MiB physical; v5e/v6e: 128 MiB).
    try:
        phys_vmem = pltpu.get_tpu_info().vmem_capacity_bytes
    except Exception:
        phys_vmem = 64 << 20            # conservative (v7x) fallback
    vmem_cap = max(8 << 20, phys_vmem - (16 << 20))

    def step_vmem(nb_, tp_):
        # double-buffered x / out tiles + single-buffered resident weight+bias
        return (2 * nb_ * (c_in * act_bytes + c_out * out_bytes) * tp_
                + c_out * c_in * act_bytes + c_out * 4 + (2 << 20))

    # --- spatial tile: as large as VMEM allows (amortize ~0.35us/step) ------
    tp = min(tile_p, _round_up(p, 128))
    while step_vmem(1, tp) > vmem_cap and tp > 128:
        tp = max(128, _round_up(tp // 2, 128))
    p_tiles = pl.cdiv(p, tp)

    # v7x has two TensorCores: keep >= 2 grid steps when N == 1.
    if n == 1 and p_tiles == 1 and tp > 128:
        tp = max(128, _round_up(-(-tp // 2), 128))
        p_tiles = pl.cdiv(p, tp)

    # --- batch folding for small spatial extents ----------------------------
    nb = 1
    if p_tiles == 1 and n > 1:
        per_img = 2 * (c_in * act_bytes + c_out * out_bytes) * tp
        nb_max = max(1, min(tile_p // tp,
                            int((vmem_cap - step_vmem(0, tp)) // per_img)))
        nb = _largest_divisor_le(n, nb_max)
        if nb == n:                      # don't collapse the grid to one step
            nb = _largest_divisor_le(n, max(1, n // 2))
    grid = (n // nb, p_tiles)

    cost = pl.CostEstimate(
        flops=int(2 * n * p * c_in * c_out),
        transcendentals=0,
        bytes_accessed=int(n * c_in * p * act_bytes
                           + c_in * c_out * act_bytes + c_out * 4
                           + n * c_out * p * out_bytes),
    )

    if small:
        # VPU path: MXU would be <2% utilized at tiny C and a sub-128 C_out
        # lane width would force masked partial stores; fused weights live as
        # SMEM scalars.
        out_flat = pl.pallas_call(
            _small_c_kernel,
            out_shape=jax.ShapeDtypeStruct((n, c_out, p), dtype),
            grid_spec=pltpu.PrefetchScalarGridSpec(
                num_scalar_prefetch=0,
                grid=grid,
                in_specs=[
                    pl.BlockSpec((nb, c_in, tp), lambda ni, pi: (ni, 0, pi)),
                    pl.BlockSpec(memory_space=pltpu.MemorySpace.SMEM),
                    pl.BlockSpec(memory_space=pltpu.MemorySpace.SMEM),
                ],
                out_specs=pl.BlockSpec((nb, c_out, tp),
                                       lambda ni, pi: (ni, 0, pi)),
            ),
            compiler_params=pltpu.CompilerParams(
                dimension_semantics=("parallel", "parallel")),
            cost_estimate=cost,
        )(x_flat, w_sum, b_sum.reshape(1, c_out))
    else:
        # MXU path: bf16 inputs at the call boundary (in a full model the
        # convert fuses into x's producer), f32 accumulation in the dot, cast
        # to the output dtype only at the store.  Full C_in contraction stays
        # in one dot (no K tiling): at C=128 it already matches the MXU width.
        compute_dtype = jnp.bfloat16 if dtype == jnp.float32 else dtype
        x_in = x_flat.astype(compute_dtype)
        wt = w_sum.T.astype(compute_dtype)            # (C_out, C_in) resident
        b_col = b_sum.reshape(c_out, 1).astype(jnp.float32)

        vmem_needed = step_vmem(nb, tp)
        vmem_limit = (int(min(vmem_needed, vmem_cap))
                      if vmem_needed > (32 << 20) else None)
        # TODO(synk): if C ever grows so large that a single-K-pass weight
        # cannot fit VMEM even at tp=128, add K tiling with an f32 accumulator.

        def run_mxu(single_buffer_weight):
            # Grid-invariant weight/bias: request a single VMEM buffer (they
            # are DMA'd once), which halves their residency for large C.
            resident_kw = ({"pipeline_mode": pl.Buffered(1)}
                           if single_buffer_weight else {})
            return pl.pallas_call(
                _mxu_kernel,
                out_shape=jax.ShapeDtypeStruct((n, c_out, p), dtype),
                grid_spec=pltpu.PrefetchScalarGridSpec(
                    num_scalar_prefetch=0,
                    grid=grid,
                    in_specs=[
                        pl.BlockSpec((nb, c_in, tp),
                                     lambda ni, pi: (ni, 0, pi)),
                        pl.BlockSpec((c_out, c_in), lambda ni, pi: (0, 0),
                                     **resident_kw),
                        pl.BlockSpec((c_out, 1), lambda ni, pi: (0, 0),
                                     **resident_kw),
                    ],
                    out_specs=pl.BlockSpec((nb, c_out, tp),
                                           lambda ni, pi: (ni, 0, pi)),
                ),
                compiler_params=pltpu.CompilerParams(
                    dimension_semantics=("parallel", "parallel"),
                    vmem_limit_bytes=vmem_limit),
                cost_estimate=cost,
            )(x_in, wt, b_col)

        try:
            out_flat = run_mxu(True)
        except Exception:
            # Older jax without single-buffer pipeline_mode support: fall back
            # to the default double-buffered resident weight (same math).
            out_flat = run_mxu(False)

    return out_flat.reshape(n, c_out, h, w)


# ---------------------------------------------------------------------------
# Tests
# ---------------------------------------------------------------------------

def _ref(x, wm, bm, ws, bs, precision=None):
    return (jnp.einsum('nchw,cd->ndhw', x, wm, precision=precision)
            + bm[None, :, None, None]
            + jnp.einsum('nchw,cd->ndhw', x, ws, precision=precision)
            + bs[None, :, None, None])


if __name__ == "__main__":
    key = jax.random.PRNGKey(0)
    (k_x, k_wm, k_bm, k_ws, k_bs,
     k_x2, k_wm2, k_ws2, k_x3) = jax.random.split(key, 9)

    # --- primary test: tiny channels (DARTS/wenet-style shapes), VPU path ---
    N, C_IN, H, W = 2, 4, 16, 16
    C_OUT = 4
    x = jax.random.normal(k_x, (N, C_IN, H, W), dtype=jnp.float32)
    w_main = jax.random.normal(k_wm, (C_IN, C_OUT), dtype=jnp.float32) * 0.1
    b_main = jax.random.normal(k_bm, (C_OUT,), dtype=jnp.float32) * 0.1
    w_search = jax.random.normal(k_ws, (C_IN, C_OUT), dtype=jnp.float32) * 0.1
    b_search = jax.random.normal(k_bs, (C_OUT,), dtype=jnp.float32) * 0.1

    out = jax.block_until_ready(
        double_branch(x, w_main, b_main, w_search, b_search))
    ref = _ref(x, w_main, b_main, w_search, b_search)
    assert out.shape == (N, C_OUT, H, W)
    assert jnp.allclose(out, ref, atol=1e-5, rtol=1e-5)

    # --- ragged-spatial test: H*W not a multiple of 128 (no wrapper pad) ----
    x3 = jax.random.normal(k_x3, (2, C_IN, 5, 5), dtype=jnp.float32)
    out3 = jax.block_until_ready(
        double_branch(x3, w_main, b_main, w_search, b_search))
    ref3 = _ref(x3, w_main, b_main, w_search, b_search)
    assert out3.shape == (2, C_OUT, 5, 5)
    assert jnp.allclose(out3, ref3, atol=1e-5, rtol=1e-5)

    # --- secondary test: realistic channels exercise the fused bf16 MXU path
    N2, C2, H2, W2 = 2, 128, 16, 16
    x2 = jax.random.normal(k_x2, (N2, C2, H2, W2), dtype=jnp.float32)
    w_main2 = jax.random.normal(k_wm2, (C2, C2), dtype=jnp.float32) * 0.05
    w_search2 = jax.random.normal(k_ws2, (C2, C2), dtype=jnp.float32) * 0.05
    b_main2 = jnp.full((C2,), 0.05, dtype=jnp.float32)
    b_search2 = jnp.full((C2,), -0.02, dtype=jnp.float32)

    out2 = jax.block_until_ready(
        double_branch(x2, w_main2, b_main2, w_search2, b_search2))
    ref2 = _ref(x2, w_main2, b_main2, w_search2, b_search2,
                precision=jax.lax.Precision.HIGHEST)
    assert out2.shape == (N2, C2, H2, W2)
    # bf16 inputs with f32 accumulation: relaxed tolerance vs f32-HIGHEST ref.
    assert jnp.allclose(out2, ref2, atol=3e-2, rtol=3e-2)

    print("KERNEL_OK")
</pallas_src>

<mosaic_0001>
module attributes {stable_mosaic.version = 11 : i64} {
  func.func @_small_c_kernel(%arg0: i32, %arg1: i32, %arg2: memref<1x4x256xf32, #tpu.memory_space<vmem>>, %arg3: memref<4x4xf32, #tpu.memory_space<smem>>, %arg4: memref<1x4xf32, #tpu.memory_space<smem>>, %arg5: memref<1x4x256xf32, #tpu.memory_space<vmem>>) attributes {dimension_semantics = [#tpu.dimension_semantics<parallel>, #tpu.dimension_semantics<parallel>], iteration_bounds = array<i64: 2, 1>, scalar_prefetch = 0 : i64, scratch_operands = 0 : i64, tpu.core_type = #tpu.core_type<tc>, window_params = [{transform_indices = @transform_0, window_bounds = array<i64: 1, 4, 256>}, {transform_indices = @transform_1, window_bounds = array<i64: 4, 4>}, {transform_indices = @transform_2, window_bounds = array<i64: 1, 4>}, {transform_indices = @transform_3, window_bounds = array<i64: 1, 4, 256>}]} {
    %c0 = arith.constant 0 : index
    %c0_0 = arith.constant 0 : index
    %c0_1 = arith.constant 0 : index
    %0 = vector.load %arg2[%c0, %c0_0, %c0_1] : memref<1x4x256xf32, #tpu.memory_space<vmem>>, vector<1x4x256xf32>
    %1 = vector.shape_cast %0 : vector<1x4x256xf32> to vector<4x256xf32>
    %2 = vector.extract_strided_slice %1 {offsets = [0, 0], sizes = [1, 256], strides = [1, 1]} : vector<4x256xf32> to vector<1x256xf32>
    %c0_2 = arith.constant 0 : index
    %c0_3 = arith.constant 0 : index
    %3 = memref.load %arg3[%c0_2, %c0_3] : memref<4x4xf32, #tpu.memory_space<smem>>
    %4 = vector.broadcast %3 : f32 to vector<1x256xf32>
    %5 = arith.mulf %2, %4 : vector<1x256xf32>
    %6 = vector.extract_strided_slice %1 {offsets = [1, 0], sizes = [1, 256], strides = [1, 1]} : vector<4x256xf32> to vector<1x256xf32>
    %c1 = arith.constant 1 : index
    %c0_4 = arith.constant 0 : index
    %7 = memref.load %arg3[%c1, %c0_4] : memref<4x4xf32, #tpu.memory_space<smem>>
    %8 = vector.broadcast %7 : f32 to vector<1x256xf32>
    %9 = arith.mulf %6, %8 : vector<1x256xf32>
    %10 = arith.addf %5, %9 : vector<1x256xf32>
    %11 = vector.extract_strided_slice %1 {offsets = [2, 0], sizes = [1, 256], strides = [1, 1]} : vector<4x256xf32> to vector<1x256xf32>
    %c2 = arith.constant 2 : index
    %c0_5 = arith.constant 0 : index
    %12 = memref.load %arg3[%c2, %c0_5] : memref<4x4xf32, #tpu.memory_space<smem>>
    %13 = vector.broadcast %12 : f32 to vector<1x256xf32>
    %14 = arith.mulf %11, %13 : vector<1x256xf32>
    %15 = arith.addf %10, %14 : vector<1x256xf32>
    %16 = vector.extract_strided_slice %1 {offsets = [3, 0], sizes = [1, 256], strides = [1, 1]} : vector<4x256xf32> to vector<1x256xf32>
    %c3 = arith.constant 3 : index
    %c0_6 = arith.constant 0 : index
    %17 = memref.load %arg3[%c3, %c0_6] : memref<4x4xf32, #tpu.memory_space<smem>>
    %18 = vector.broadcast %17 : f32 to vector<1x256xf32>
    %19 = arith.mulf %16, %18 : vector<1x256xf32>
    %20 = arith.addf %15, %19 : vector<1x256xf32>
    %c0_7 = arith.constant 0 : index
    %c0_8 = arith.constant 0 : index
    %21 = memref.load %arg4[%c0_7, %c0_8] : memref<1x4xf32, #tpu.memory_space<smem>>
    %22 = vector.broadcast %21 : f32 to vector<1x256xf32>
    %23 = arith.addf %20, %22 : vector<1x256xf32>
    %24 = vector.extract_strided_slice %1 {offsets = [0, 0], sizes = [1, 256], strides = [1, 1]} : vector<4x256xf32> to vector<1x256xf32>
    %c0_9 = arith.constant 0 : index
    %c1_10 = arith.constant 1 : index
    %25 = memref.load %arg3[%c0_9, %c1_10] : memref<4x4xf32, #tpu.memory_space<smem>>
    %26 = vector.broadcast %25 : f32 to vector<1x256xf32>
    %27 = arith.mulf %24, %26 : vector<1x256xf32>
    %28 = vector.extract_strided_slice %1 {offsets = [1, 0], sizes = [1, 256], strides = [1, 1]} : vector<4x256xf32> to vector<1x256xf32>
    %c1_11 = arith.constant 1 : index
    %c1_12 = arith.constant 1 : index
    %29 = memref.load %arg3[%c1_11, %c1_12] : memref<4x4xf32, #tpu.memory_space<smem>>
    %30 = vector.broadcast %29 : f32 to vector<1x256xf32>
    %31 = arith.mulf %28, %30 : vector<1x256xf32>
    %32 = arith.addf %27, %31 : vector<1x256xf32>
    %33 = vector.extract_strided_slice %1 {offsets = [2, 0], sizes = [1, 256], strides = [1, 1]} : vector<4x256xf32> to vector<1x256xf32>
    %c2_13 = arith.constant 2 : index
    %c1_14 = arith.constant 1 : index
    %34 = memref.load %arg3[%c2_13, %c1_14] : memref<4x4xf32, #tpu.memory_space<smem>>
    %35 = vector.broadcast %34 : f32 to vector<1x256xf32>
    %36 = arith.mulf %33, %35 : vector<1x256xf32>
    %37 = arith.addf %32, %36 : vector<1x256xf32>
    %38 = vector.extract_strided_slice %1 {offsets = [3, 0], sizes = [1, 256], strides = [1, 1]} : vector<4x256xf32> to vector<1x256xf32>
    %c3_15 = arith.constant 3 : index
    %c1_16 = arith.constant 1 : index
    %39 = memref.load %arg3[%c3_15, %c1_16] : memref<4x4xf32, #tpu.memory_space<smem>>
    %40 = vector.broadcast %39 : f32 to vector<1x256xf32>
    %41 = arith.mulf %38, %40 : vector<1x256xf32>
    %42 = arith.addf %37, %41 : vector<1x256xf32>
    %c0_17 = arith.constant 0 : index
    %c1_18 = arith.constant 1 : index
    %43 = memref.load %arg4[%c0_17, %c1_18] : memref<1x4xf32, #tpu.memory_space<smem>>
    %44 = vector.broadcast %43 : f32 to vector<1x256xf32>
    %45 = arith.addf %42, %44 : vector<1x256xf32>
    %46 = vector.extract_strided_slice %1 {offsets = [0, 0], sizes = [1, 256], strides = [1, 1]} : vector<4x256xf32> to vector<1x256xf32>
    %c0_19 = arith.constant 0 : index
    %c2_20 = arith.constant 2 : index
    %47 = memref.load %arg3[%c0_19, %c2_20] : memref<4x4xf32, #tpu.memory_space<smem>>
    %48 = vector.broadcast %47 : f32 to vector<1x256xf32>
    %49 = arith.mulf %46, %48 : vector<1x256xf32>
    %50 = vector.extract_strided_slice %1 {offsets = [1, 0], sizes = [1, 256], strides = [1, 1]} : vector<4x256xf32> to vector<1x256xf32>
    %c1_21 = arith.constant 1 : index
    %c2_22 = arith.constant 2 : index
    %51 = memref.load %arg3[%c1_21, %c2_22] : memref<4x4xf32, #tpu.memory_space<smem>>
    %52 = vector.broadcast %51 : f32 to vector<1x256xf32>
    %53 = arith.mulf %50, %52 : vector<1x256xf32>
    %54 = arith.addf %49, %53 : vector<1x256xf32>
    %55 = vector.extract_strided_slice %1 {offsets = [2, 0], sizes = [1, 256], strides = [1, 1]} : vector<4x256xf32> to vector<1x256xf32>
    %c2_23 = arith.constant 2 : index
    %c2_24 = arith.constant 2 : index
    %56 = memref.load %arg3[%c2_23, %c2_24] : memref<4x4xf32, #tpu.memory_space<smem>>
    %57 = vector.broadcast %56 : f32 to vector<1x256xf32>
    %58 = arith.mulf %55, %57 : vector<1x256xf32>
    %59 = arith.addf %54, %58 : vector<1x256xf32>
    %60 = vector.extract_strided_slice %1 {offsets = [3, 0], sizes = [1, 256], strides = [1, 1]} : vector<4x256xf32> to vector<1x256xf32>
    %c3_25 = arith.constant 3 : index
    %c2_26 = arith.constant 2 : index
    %61 = memref.load %arg3[%c3_25, %c2_26] : memref<4x4xf32, #tpu.memory_space<smem>>
    %62 = vector.broadcast %61 : f32 to vector<1x256xf32>
    %63 = arith.mulf %60, %62 : vector<1x256xf32>
    %64 = arith.addf %59, %63 : vector<1x256xf32>
    %c0_27 = arith.constant 0 : index
    %c2_28 = arith.constant 2 : index
    %65 = memref.load %arg4[%c0_27, %c2_28] : memref<1x4xf32, #tpu.memory_space<smem>>
    %66 = vector.broadcast %65 : f32 to vector<1x256xf32>
    %67 = arith.addf %64, %66 : vector<1x256xf32>
    %68 = vector.extract_strided_slice %1 {offsets = [0, 0], sizes = [1, 256], strides = [1, 1]} : vector<4x256xf32> to vector<1x256xf32>
    %c0_29 = arith.constant 0 : index
    %c3_30 = arith.constant 3 : index
    %69 = memref.load %arg3[%c0_29, %c3_30] : memref<4x4xf32, #tpu.memory_space<smem>>
    %70 = vector.broadcast %69 : f32 to vector<1x256xf32>
    %71 = arith.mulf %68, %70 : vector<1x256xf32>
    %72 = vector.extract_strided_slice %1 {offsets = [1, 0], sizes = [1, 256], strides = [1, 1]} : vector<4x256xf32> to vector<1x256xf32>
    %c1_31 = arith.constant 1 : index
    %c3_32 = arith.constant 3 : index
    %73 = memref.load %arg3[%c1_31, %c3_32] : memref<4x4xf32, #tpu.memory_space<smem>>
    %74 = vector.broadcast %73 : f32 to vector<1x256xf32>
    %75 = arith.mulf %72, %74 : vector<1x256xf32>
    %76 = arith.addf %71, %75 : vector<1x256xf32>
    %77 = vector.extract_strided_slice %1 {offsets = [2, 0], sizes = [1, 256], strides = [1, 1]} : vector<4x256xf32> to vector<1x256xf32>
    %c2_33 = arith.constant 2 : index
    %c3_34 = arith.constant 3 : index
    %78 = memref.load %arg3[%c2_33, %c3_34] : memref<4x4xf32, #tpu.memory_space<smem>>
    %79 = vector.broadcast %78 : f32 to vector<1x256xf32>
    %80 = arith.mulf %77, %79 : vector<1x256xf32>
    %81 = arith.addf %76, %80 : vector<1x256xf32>
    %82 = vector.extract_strided_slice %1 {offsets = [3, 0], sizes = [1, 256], strides = [1, 1]} : vector<4x256xf32> to vector<1x256xf32>
    %c3_35 = arith.constant 3 : index
    %c3_36 = arith.constant 3 : index
    %83 = memref.load %arg3[%c3_35, %c3_36] : memref<4x4xf32, #tpu.memory_space<smem>>
    %84 = vector.broadcast %83 : f32 to vector<1x256xf32>
    %85 = arith.mulf %82, %84 : vector<1x256xf32>
    %86 = arith.addf %81, %85 : vector<1x256xf32>
    %c0_37 = arith.constant 0 : index
    %c3_38 = arith.constant 3 : index
    %87 = memref.load %arg4[%c0_37, %c3_38] : memref<1x4xf32, #tpu.memory_space<smem>>
    %88 = vector.broadcast %87 : f32 to vector<1x256xf32>
    %89 = arith.addf %86, %88 : vector<1x256xf32>
    %90 = tpu.concatenate %23, %45, %67, %89 in 0 : vector<1x256xf32>, vector<1x256xf32>, vector<1x256xf32>, vector<1x256xf32> -> vector<4x256xf32>
    %91 = vector.shape_cast %90 : vector<4x256xf32> to vector<1x4x256xf32>
    %c0_39 = arith.constant 0 : index
    %c0_40 = arith.constant 0 : index
    %c0_41 = arith.constant 0 : index
    %92 = vector.load %arg5[%c0_39, %c0_40, %c0_41] : memref<1x4x256xf32, #tpu.memory_space<vmem>>, vector<1x4x256xf32>
    tpu.vector_store %arg5[%c0_39, %c0_40, %c0_41], %91 {strides = array<i32>} : memref<1x4x256xf32, #tpu.memory_space<vmem>>, vector<1x4x256xf32>,
    return
  }
  func.func @transform_0(%arg0: i32, %arg1: i32) -> (i32, i32, i32) {
    %c0_i32 = arith.constant 0 : i32
    %c0_i32_0 = arith.constant 0 : i32
    return %arg0, %c0_i32, %arg1 : i32, i32, i32
  }
  func.func @transform_1(%arg0: i32, %arg1: i32) -> (i32, i32) {
    %c0_i32 = arith.constant 0 : i32
    %c0_i32_0 = arith.constant 0 : i32
    %c0_i32_1 = arith.constant 0 : i32
    return %c0_i32, %c0_i32_0 : i32, i32
  }
  func.func @transform_2(%arg0: i32, %arg1: i32) -> (i32, i32) {
    %c0_i32 = arith.constant 0 : i32
    %c0_i32_0 = arith.constant 0 : i32
    %c0_i32_1 = arith.constant 0 : i32
    return %c0_i32, %c0_i32_0 : i32, i32
  }
  func.func @transform_3(%arg0: i32, %arg1: i32) -> (i32, i32, i32) {
    %c0_i32 = arith.constant 0 : i32
    %c0_i32_0 = arith.constant 0 : i32
    return %arg0, %c0_i32, %arg1 : i32, i32, i32
  }
}

</mosaic_0001>

<bundles_post_ra>
// kernel: tpu_custom_call.1
= control target key start
LH: loop header
LB: loop body
LE: loop exit
PB: predicated region body
PF: predicated region fallthrough
CT: control target
= control target key end

     0   :  { %8 = vsyncpa [#allocation3], 0  ;;  %s1142_s0 = inlined_call_operand.hbm [shape: f32[2,4,256], index: 0, kind: input, shape index: {}]   ;;  %s1143_s1 = inlined_call_operand.hbm [shape: f32[4,4], index: 1, kind: input, shape index: {}]   ;;  %s1144_s2 = inlined_call_operand.vmem [shape: f32[1,4], index: 2, kind: input, shape index: {}]   ;;  %s1145_s3 = inlined_call_operand.hbm [shape: f32[2,4,256], index: 3, kind: output, shape index: {}]  }
   0x1   :  { %10 = vsyncpa [#allocation3 + $0x1], 0 }
   0x2   :  { %11 = vsyncpa [#allocation5], 0 }
   0x3   :  { %12 = vsyncpa [#allocation6], 0 }
   0x4   :  { %13 = vsyncpa [#allocation4], 0 }
   0x5   :  { %15 = vsyncpa [#allocation4 + $0x1], 0  ;;  %s844_s12 = smov 0   ;;  %s846_s13 = smov 0  }
   0x6   :  { %s848_s14 = smov 0   ;;  %s850_s15 = smov 0  }
   0x7   :  { %s852_s16 = smov 0   ;;  %s854_s17 = smov 0  }
   0x8 LB: > { %s536_s18 = sadd.s32 4294967295, %s818_s17   ;;  %s537_s19 = sadd.s32 4294967294, %s818_s17   ;;  %s818_s17 = sphi %s854_s17, %s21_s17   ;;  %s814_s16 = sphi %s852_s16, %s1168_s16   ;;  %s810_s15 = sphi %s850_s15, %s1167_s15   ;;  %s806_s14 = sphi %s848_s14, %s1166_s14   ;;  %s802_s13 = sphi %s846_s13, %s1165_s13   ;;  %s798_s12 = sphi %s844_s12, %s1164_s12  }
   0x9   : > { %p55_p0 = scmp.ne.s32.totalorder %s802_s13, %s798_s12  ;;  %p878_p1 = scmp.eq.s32.totalorder %s536_s18, 0 }
   0xa   : > { %p882_p2 = scmp.eq.s32.totalorder %s536_s18, 1  ;;  %p129_p3 = scmp.eq.s32.totalorder %s537_s19, 1 }
   0xb   : > { %s1150_s20 = scalar_select %p878_p1, 1, 0 }
   0xc   : > { %p888_p4 = por %p878_p1, %p55_p0  ;;  %p538_p5 = scmp.ge.s32.totalorder %s818_s17, 1 }
   0xd   : > { %p893_p6 = por %p129_p3, %p55_p0  ;;  %p136_p7 = scmp.lt.s32.totalorder %s818_s17, 3 }
   0xe   : > { %s1152_s22 = scalar_select %p888_p4, 1, 0 }
   0xf   : > { %s1153_s23 = scalar_select %p893_p6, 1, 0 }
  0x10   : > { %p898_p8 = pnand %p538_p5, %p136_p7  ;;  %s158_s27 = sshll.u32 %s1144_s2, 4  ;;  %s159_s27 = int_to_ptr.vmem [resolvable:$true] %s158_s27 }
  0x11   : > { %s33_s29 = sadd.s32 1, %s814_s16  ;;  %s670_s6 = scalar_lea.hbm %s1143_s1, 64 }
  0x12   : > { %s1154_s24 = scalar_select %p898_p8, 1, 0 }
  0x13   : > { %p599_p10 = pneg %p898_p8  ;;  %p915_p12 = scmp.ge.s32.totalorder %s33_s29, 2 }
  0x14   : > { %p671_p13 = scmp.ne.s32.totalorder %s1143_s1, %s670_s6  ;;  %p677_p7 = scmp.lt.u32.totalorder %s670_s6, %s1143_s1 }
  0x15   : > { %p910_p11 = pnand %p599_p10, %p878_p1 }
  0x17   : > { %p672_p0 = pneg %p910_p11 }
  0x19   : > { %p673_p3 = pnand %p672_p0, %p671_p13 }
  0x1b   : > { %p674_p5 = pneg %p673_p3 }
  0x1d   : > { %p679_p10 = pnand %p677_p7, %p674_p5 }
  0x1f   : > { %682 = shalt.err (!%p679_p10)
}
  0x20   : > { %s820_s11 = smov [#allocation7]   ;;  %s683_s25 = scalar_lea.vmem %s159_s27, 16 }
  0x21   : > { %602 = dma.hbm_to_smem (!%p910_p11), %s1143_s1, 64, %s820_s11, [#allocation5]  }
  0x22   : > { %p684_p9 = scmp.ne.s32.totalorder %s159_s27, %s683_s25  ;;  %p691_p4 = scmp.lt.s32.totalorder %s159_s27, %s159_s27 }
  0x23   : > { %p692_p13 = scmp.lt.s32.totalorder %s683_s25, %s683_s25 }
  0x24   : > { %p686_p6 = pnand %p684_p9, %p672_p0 }
  0x25   : > { %p693_p3 = por %p692_p13, %p691_p4 }
  0x26   : > { %p687_p1 = pneg %p686_p6 }
  0x28   : > { %p694_p8 = pnand %p693_p3, %p687_p1 }
  0x2a   : > { %697 = shalt.err (!%p694_p8)
}
  0x2b   : > { %s821_s26 = smov [#allocation8]   ;;  %s1170_s29 = smov (%p915_p12, %s33_s29), 0 }
  0x2c   : > { %605 = dma.vmem_to_smem (!%p910_p11), %s159_s27, 16, %s821_s26, [#allocation6]  }
  0x2d   : > { %s42_s4 = sadd.s32 1, %s806_s14  ;;  %p49_p1 = scmp.ne.s32.totalorder %s806_s14, %s802_s13 }
  0x2e   : > { %s37_s5 = ssub.s32 %s814_s16, %s1170_s29  ;;  %p50_p4 = scmp.eq.s32.totalorder %s818_s17, 0 }
  0x2f   : > { %p40_p6 = scmp.eq.s32.totalorder %s37_s5, 0  ;;  %p949_p8 = por %p882_p2, %p49_p1 }
  0x30   : > { %p51_p9 = por %p50_p4, %p49_p1  ;;  %p616_p0 = scmp.lt.s32.totalorder %s818_s17, 2 }
  0x31   : > { %s955_s6 = scalar_select %p40_p6, %s806_s14, %s42_s4  }
  0x32   : > { %s169_s7 = sand.u32 1, %s806_s14   ;;  %s585_s27 = sshll.u32 %s814_s16, 7 }
  0x33   : > { %s542_s30 = sshll.u32 %s169_s7, 3  ;;  %s962_s10 = scalar_lea.hbm %s1142_s0, %s585_s27 }
  0x34   : > { %s173_s21 = scalar_lea.vmem [#allocation2], %s542_s30  ;;  %p964_p2 = pnand %p616_p0, %p51_p9 }
  0x35   : > { %s183_s11 = sshll.u32 %s173_s21, 4  ;;  %s170_s19 = scalar_lea.sflag [#allocation3], %s169_s7  ;;  %s968_s11 = int_to_ptr.vmem [resolvable:$true] %s183_s11 }
  0x36   : > { %s698_s25 = scalar_lea.hbm %s962_s10, 128  ;;  %p700_p12 = pneg %p964_p2 }
  0x37   : > { %p699_p11 = scmp.ne.s32.totalorder %s962_s10, %s698_s25  ;;  %s703_s5 = scalar_lea.hbm %s1142_s0, 256 }
  0x38   : > { %p704_p10 = scmp.lt.u32.totalorder %s962_s10, %s1142_s0  ;;  %p705_p13 = scmp.lt.u32.totalorder %s703_s5, %s698_s25 }
  0x39   : > { %p701_p5 = pnand %p700_p12, %p699_p11  ;;  %p707_p1 = scmp.lt.u32.totalorder %s698_s25, %s962_s10 }
  0x3a   : > { %p706_p3 = por %p705_p13, %p704_p10 }
  0x3b   : > { %p702_p7 = pneg %p701_p5 }
  0x3c   : > { %p708_p4 = por %p707_p1, %p706_p3 }
  0x3e   : > { %p709_p6 = pnand %p708_p4, %p702_p7 }
  0x40   : > { %712 = shalt.err (!%p709_p6)
}
  0x41   : > { %s713_s7 = scalar_lea.vmem %s968_s11, 128  ;;  %s822_s8 = smov [#allocation2]  }
  0x42   : > { %p714_p9 = scmp.ne.s32.totalorder %s968_s11, %s713_s7  ;;  %s718_s9 = sshll.u32 %s822_s8, 4  ;;  %s719_s9 = int_to_ptr.vmem [resolvable:$false] %s718_s9 }
  0x43   : > { %s720_s21 = scalar_lea.vmem %s719_s9, 256  ;;  %p721_p5 = scmp.lt.s32.totalorder %s968_s11, %s719_s9 }
  0x44   : > { %p716_p0 = pnand %p714_p9, %p700_p12  ;;  %p722_p10 = scmp.lt.s32.totalorder %s720_s21, %s713_s7 }
  0x46   : > { %p717_p11 = pneg %p716_p0  ;;  %p723_p13 = por %p722_p10, %p721_p5 }
  0x48   : > { %p724_p3 = pnand %p723_p13, %p717_p11 }
  0x4a   : > { %727 = shalt.err (!%p724_p3)
}
  0x4b   : > { %609 = dma.hbm_to_vmem [thread:$0]  (!%p964_p2), %s962_s10, 128, %s968_s11, %s170_s19  }
  0x4c   : > { %p1159_p7 = scmp.ne.s32.totalorder %s1154_s24, 0 }
  0x4d   : > { %s998_s25 = sand.u32 (!%p1159_p7), 1, %s802_s13   ;;  %p1160_p12 = scmp.ne.s32.totalorder (!%p1159_p7), %s1152_s22, 0 }
  0x4e   : > { %192 = sbr.rel (%p1159_p7) target bundleno = 141 (0x8d), region = 32  ;;  %s546_s26 = sshll.u32 (!%p1159_p7), %s998_s25, 3 }
  0x4f   : > { %s195_s4 = scalar_lea.sflag (!%p1159_p7), [#allocation3], %s998_s25  ;;  %s198_s5 = scalar_lea.vmem (!%p1159_p7), [#allocation2], %s546_s26 }
  0x55   : > { %781 = dma.done.wait (%p1160_p12), %s195_s4, 128  }
  0x56   : > { %783 = vsyncadd (%p1160_p12), %s195_s4, 4294967168  ;;  %p1161_p2 = scmp.ne.s32.totalorder %s1150_s20, 0 }
  0x58   : > { %785 = dma.done.wait (%p1161_p2), [#allocation5], 64  }
  0x59   : > { %787 = vsyncadd (%p1161_p2), [#allocation5], 4294967232 }
  0x5a   : > { %789 = dma.done.wait (%p1161_p2), [#allocation6], 16  }
  0x5b   : > { %791 = vsyncadd (%p1161_p2), [#allocation6], 4294967280 }
  0x5c   : > { %211 = sfence }
  0x5d   : > { %s233_s24 = sld [smem:[#allocation7]]  ;;  %v354_v0 = vlaneseq  ;;  %s556_s19 = sld [smem:[#allocation7 + $0x1]]  ;;  %v1022_v2 = vld [vmem:[%s198_s5] sm:$0xff]  ;;  %vm397_vm0 = vcmask 1040384   ;;  %vm400_vm1 = vcmask 1041408   ;;  %vm403_vm2 = vcmask 1042432  }
  0x5e   : > { %s550_s10 = sld [smem:[#allocation7 + $0x80]]  ;;  %s557_s27 = sld [smem:[#allocation7 + $0x81]] }
  0x5f   : > { %s552_s11 = sld [smem:[#allocation7 + $0x100]]  ;;  %v355_v1 = vshrl.u32 %v354_v0, 7  ;;  %s1018_s30 = sld [smem:[#allocation7 + $0x101]] }
  0x60   : > { %s554_s18 = sld [smem:[#allocation7 + $0x180]]  ;;  %s1020_s7 = sld [smem:[#allocation7 + $0x181]] }
  0x61   : > { %s1016_s22 = sld [smem:[#allocation8]]  ;;  %s1024_s8 = sld [smem:[#allocation7 + $0x2]]  ;;  %v1032_v6 = vsub.s32 0, %v355_v1  ;;  %v1042_v14 = vsub.s32 4, %v355_v1 }
  0x62   : > { %s1026_s20 = sld [smem:[#allocation7 + $0x82]]  ;;  %s1037_s4 = sld [smem:[#allocation8 + $0x1]] }
  0x63   : > { %v234_v3 = vstv %s233_s24  ;;  %s1028_s9 = sld [smem:[#allocation7 + $0x102]]  ;;  %s1039_s5 = sld [smem:[#allocation7 + $0x3]]  ;;  %v264_v12 = vstv %s556_s19 }
  0x64   : > { %v237_v4 = vstv %s550_s10  ;;  %s1030_s21 = sld [smem:[#allocation7 + $0x182]]  ;;  %v235_v7 = vmul.f32 %v234_v3, %v1022_v2  ;;  %v267_v13 = vstv %s557_s27  ;;  %v265_v17 = vmul.f32 %v264_v12, %v1022_v2  ;;  %s1046_s24 = sld [smem:[#allocation7 + $0x83]] }
  0x65   : > { %v245_v5 = vstv %s552_s11  ;;  %v238_v8 = vmul.f32 %v237_v4, %v1022_v2  ;;  %v268_v18 = vmul.f32 %v267_v13, %v1022_v2  ;;  %s1048_s10 = sld [smem:[#allocation7 + $0x103]]  ;;  %v275_v21 = vstv %s1018_s30  ;;  %s229_s19 = scalar_lea.vmem [#allocation9], %s546_s26 }
  0x66   : > { %v246_v9 = vmul.f32 %v245_v5, %v1022_v2  ;;  %v253_v10 = vstv %s554_s18  ;;  %v283_v22 = vstv %s1020_s7  ;;  %s1053_s11 = sld [smem:[#allocation7 + $0x183]]  ;;  %v276_v25 = vmul.f32 %v275_v21, %v1022_v2  ;;  %s1061_s18 = sld [smem:[#allocation8 + $0x2]] }
  0x67   : > { %v254_v11 = vmul.f32 %v253_v10, %v1022_v2  ;;  %v551_v15 = vrot.slane %v238_v8, 9  ;;  %v261_v20 = vstv %s1016_s22  ;;  %v558_v24 = vrot.slane %v268_v18, 9  ;;  %s579_s22 = sld [smem:[#allocation8 + $0x3]]  ;;  %s428_s27 = sshll.u32 %s229_s19, 4  ;;  %s1090_s27 = int_to_ptr.vmem [resolvable:$true] %s428_s27 }
  0x68   : > { %v553_v16 = vrot.slane %v246_v9, 10  ;;  %v284_v26 = vmul.f32 %v283_v22, %v1022_v2  ;;  %v294_v27 = vstv %s1024_s8  ;;  %v297_v28 = vstv %s1026_s20  ;;  %s586_s30 = sshll.u32 %s810_s15, 7  ;;  %s412_s26 = scalar_lea.sflag [#allocation4], %s998_s25 }
  0x69   : > { %v555_v19 = vrot.slane %v254_v11, 11  ;;  %v243_v23 = vadd.f32 %v551_v15, %v235_v7  ;;  %v305_v29 = vstv %s1028_s9  ;;  %v273_v32 = vadd.f32 %v558_v24, %v265_v17  ;;  %s1095_s20 = scalar_lea.hbm %s1145_s3, %s586_s30  ;;  %s728_s9 = scalar_lea.vmem %s1090_s27, 128 }
  0x6a   : > { %v313_v30 = vstv %s1030_s21  ;;  %v560_v33 = vrot.slane %v276_v25, 10  ;;  %v562_v34 = vrot.slane %v284_v26, 11  ;;  %v295_v35 = vmul.f32 %v294_v27, %v1022_v2  ;;  %p729_p1 = scmp.ne.s32.totalorder %s1090_s27, %s728_s9  ;;  %s823_s15 = smov [#allocation9]  }
  0x6b   : > { %v251_v31 = vadd.f32 %v553_v16, %v243_v23  ;;  %v298_v36 = vmul.f32 %v297_v28, %v1022_v2  ;;  %v306_v37 = vmul.f32 %v305_v29, %v1022_v2  ;;  %v314_v38 = vmul.f32 %v313_v30, %v1022_v2  ;;  %s732_s21 = sshll.u32 %s823_s15, 4  ;;  %s733_s21 = int_to_ptr.vmem [resolvable:$false] %s732_s21 }
  0x6c   : > { %v281_v40 = vadd.f32 %v560_v33, %v273_v32  ;;  %v291_v41 = vstv %s1037_s4  ;;  %v324_v42 = vstv %s1039_s5  ;;  %v327_v49 = vstv %s1046_s24  ;;  %p730_p4 = pnand %p729_p1, %p949_p8  ;;  %s734_s4 = scalar_lea.vmem %s733_s21, 256 }
  0x6d   : > { %v259_v39 = vadd.f32 %v555_v19, %v251_v31  ;;  %v566_v43 = vrot.slane %v298_v36, 9  ;;  %v568_v44 = vrot.slane %v306_v37, 10  ;;  %v570_v45 = vrot.slane %v314_v38, 11  ;;  %p735_p9 = scmp.lt.s32.totalorder %s1090_s27, %s733_s21  ;;  %p736_p0 = scmp.lt.s32.totalorder %s734_s4, %s728_s9 }
  0x6e   : > { %v325_v46 = vmul.f32 %v324_v42, %v1022_v2  ;;  %v289_v48 = vadd.f32 %v562_v34, %v281_v40  ;;  %v335_v50 = vstv %s1048_s10  ;;  %v328_v52 = vmul.f32 %v327_v49, %v1022_v2  ;;  %p731_p6 = pneg %p730_p4 }
  0x6f   : > { %v262_v47 = vadd.f32 %v261_v20, %v259_v39  ;;  %v303_v51 = vadd.f32 %v566_v43, %v295_v35  ;;  %v336_v53 = vmul.f32 %v335_v50, %v1022_v2  ;;  %v343_v54 = vstv %s1053_s11  ;;  %p737_p11 = por %p736_p0, %p735_p9 }
  0x70   : > { %v292_v55 = vadd.f32 %v291_v41, %v289_v48  ;;  %v344_v56 = vmul.f32 %v343_v54, %v1022_v2  ;;  %v574_v58 = vrot.slane %v328_v52, 9  ;;  %v321_v60 = vstv %s1061_s18 }
  0x71   : > { %v311_v57 = vadd.f32 %v568_v44, %v303_v51  ;;  %v576_v59 = vrot.slane %v336_v53, 10  ;;  %v357_v61 = vrot.slane %v262_v47, %v1032_v6  ;;  %v361_v62 = vrot.slane %v262_v47, %v1042_v14  ;;  %p738_p5 = pnand %p737_p11, %p731_p6 }
  0x72   : > { %v368_v63 = vrot.slane %v292_v55, %v1032_v6  ;;  %v333_v1 = vadd.f32 %v574_v58, %v325_v46  ;;  %v578_v3 = vrot.slane %v344_v56, 11  ;;  %v372_v4 = vrot.slane %v292_v55, %v1042_v14 }
  0x73   : > { %v319_v0 = vadd.f32 %v570_v45, %v311_v57  ;;  %v351_v2 = vstv %s579_s22 }
  0x74   : > { %v341_v7 = vadd.f32 %v576_v59, %v333_v1  ;;  %v398_v8 = vsel %vm397_vm0, %v357_v61, %v368_v63  ;;  %v399_v12 = vsel %vm397_vm0, %v361_v62, %v372_v4 }
  0x75   : > { %v322_v5 = vadd.f32 %v321_v60, %v319_v0 }
  0x76   : > { %v349_v9 = vadd.f32 %v578_v3, %v341_v7 }
  0x77   : > { %v379_v10 = vrot.slane %v322_v5, %v1032_v6  ;;  %v383_v11 = vrot.slane %v322_v5, %v1042_v14 }
  0x78   : > { %v352_v13 = vadd.f32 %v351_v2, %v349_v9 }
  0x79   : > { %v401_v15 = vsel %vm400_vm1, %v398_v8, %v379_v10  ;;  %v402_v16 = vsel %vm400_vm1, %v399_v12, %v383_v11 }
  0x7a   : > { %v390_v17 = vrot.slane %v352_v13, %v1032_v6  ;;  %v394_v18 = vrot.slane %v352_v13, %v1042_v14 }
  0x7c   : > { %v404_v19 = vsel %vm403_vm2, %v401_v15, %v390_v17  ;;  %v405_v20 = vsel %vm403_vm2, %v402_v16, %v394_v18 }
  0x7d   : > { %v408_v21 = vcombine.low %v404_v19, %v405_v20 }
  0x7f   : > { %410 = vst [vmem:[%s229_s19] sm:$0xff] %v408_v21 }
  0x80   : > { %741 = shalt.err (!%p738_p5)
}
  0x81   : > { %s742_s25 = scalar_lea.hbm %s1095_s20, 128  ;;  %s746_s10 = scalar_lea.hbm %s1145_s3, 256 }
  0x82   : > { %p743_p10 = scmp.ne.s32.totalorder %s1095_s20, %s742_s25  ;;  %p747_p7 = scmp.lt.u32.totalorder %s1095_s20, %s1145_s3 }
  0x83   : > { %p748_p12 = scmp.lt.u32.totalorder %s746_s10, %s742_s25  ;;  %p750_p1 = scmp.lt.u32.totalorder %s742_s25, %s1095_s20 }
  0x84   : > { %p744_p13 = pnand %p743_p10, %p949_p8 }
  0x85   : > { %p749_p2 = por %p748_p12, %p747_p7 }
  0x86   : > { %p745_p3 = pneg %p744_p13 }
  0x87   : > { %p751_p4 = por %p750_p1, %p749_p2 }
  0x89   : > { %p752_p6 = pnand %p751_p4, %p745_p3 }
  0x8b   : > { %755 = shalt.err (!%p752_p6)
}
  0x8c   : > { %597 = dma.vmem_to_hbm [thread:$0]  (%p949_p8), %s1090_s27, 128, %s1095_s20, %s412_s26  }
  0x8d PF: > { %s440_s22 = sand.u32 1, %s798_s12   ;;  %p1162_p9 = scmp.ne.s32.totalorder %s1153_s23, 0 }
  0x8e   : > { %p1163_p0 = scmp.ge.s32.totalorder %s818_s17, 2  ;;  %s441_s19 = scalar_lea.sflag [#allocation4], %s440_s22 }
  0x90   : > { %p611_p11 = pnand %p1163_p0, %p1162_p9 }
  0x92   : > { %793 = dma.done.wait (!%p611_p11), %s441_s19, 128  }
  0x93   : > { %795 = vsyncadd (!%p611_p11), %s441_s19, 4294967168  ;;  %s21_s17 = sadd.s32 1, %s818_s17   ;;  %s1164_s12 = smov %s802_s13 }
  0x94   : > { %p18_p5 = scmp.ge.s32.totalorder %s21_s17, 4   ;;  %s1165_s13 = smov %s806_s14 }
  0x95   : > { %s1166_s14 = smov %s955_s6  ;;  %s1167_s15 = smov %s814_s16 }
  0x96   : > { %s1168_s16 = smov %s1170_s29  ;;  %20 = sbr.rel (!%p18_p5) target bundleno = 8 (0x8), region = 87 }
  0x9d   :  { %446 = vsyncpa [#allocation3], 1 }
  0x9e   :  { %448 = vsyncpa [#allocation3 + $0x1], 1 }
  0x9f   :  { %449 = vsyncpa [#allocation4], 1 }
  0xa0   :  { %451 = vsyncpa [#allocation4 + $0x1], 1 }
  0xa1   :  { %452 = vsyncpa [#allocation5], 1 }
  0xa2   :  { %454 = vsyncpa [#allocation5 + $0x1], 1 }
  0xa3   :  { %455 = vsyncpa [#allocation6], 1 }
  0xa4   :  { %457 = vsyncpa [#allocation6 + $0x1], 1 }

</bundles_post_ra>
